<compile_context>
chip_gen: v5e
topology: v5e:2x2
jax: 0.10.0
libtpu: 0.0.40
codegen_flags: <defaults>
</compile_context>

<pallas_src>
from functools import partial

import jax
import jax.numpy as jnp
from jax.experimental import pallas as pl
from jax.experimental.pallas import tpu as pltpu

LANE = 128
_VMEM_BUDGET = 28 << 20  # conservative per-step working-set budget (fits all gens)


def value_mlp_kernel(hT_ref, w1T_ref, b1_ref, w2T_ref, b2_ref, w3_ref, b3_ref, o_ref):
    # fc1 + ReLU (concat already fused into the single [S+A, TB] input slab).
    h1 = (jnp.dot(w1T_ref[...], hT_ref[...], preferred_element_type=jnp.float32)
          + b1_ref[...])                                        # [H, TB] f32
    h1 = jnp.maximum(h1, 0.0).astype(w2T_ref.dtype)             # bf16 in the bf16 path
    # fc2 + ReLU
    h2 = (jnp.dot(w2T_ref[...], h1, preferred_element_type=jnp.float32)
          + b2_ref[...])                                        # [H, TB] f32
    h2 = jnp.maximum(h2, 0.0)
    # fc3 (output width 1): VPU multiply + sublane reduction keeps the MXU clear.
    out = jnp.sum(h2 * w3_ref[...], axis=0, keepdims=True) + b3_ref[...]   # [1, TB]
    o_ref[...] = out.astype(o_ref.dtype)


def _round_up(n, m):
    return ((n + m - 1) // m) * m


def _num_tensorcores():
    """Best-effort TensorCore count; falls back to 1 (single-TC v5e/v6e behavior)."""
    try:
        info = pltpu.get_tpu_info()
        for attr in ("num_cores", "core_count", "num_tensorcores", "tensorcore_count"):
            n = getattr(info, attr, None)
            if isinstance(n, int) and n > 0:
                return n
    except Exception:
        pass
    try:
        kind = jax.devices()[0].device_kind.lower()
        if "v7" in kind:
            return 2
    except Exception:
        pass
    return 1


@partial(jax.jit, static_argnames=("tile_b", "use_bf16"))
def value_mlp_forward(x, action, params, *, tile_b=8192, use_bf16=False):
    """x: [B, state_dim], action: [B, action_dim] -> [B, 1]."""
    w1, b1, w2, b2, w3, b3 = params   # w1:[S+A,H] b1:[1,H] w2:[H,H] b2:[1,H] w3:[H,1] b3:[1,1]
    B, S = x.shape
    A = action.shape[-1]
    H = w1.shape[1]
    assert w1.shape[0] == S + A

    io_dtype = jnp.bfloat16 if use_bf16 else jnp.float32
    itemsize = 2 if use_bf16 else 4
    in_rows = _round_up(S + A, 8)

    # --- Batch-tile sizing -------------------------------------------------------
    # Lane-dense tile (multiple of 128), capped by a per-step VMEM budget:
    #   double-buffered input + output blocks + the two [H, tile_b] f32 intermediates.
    per_lane_bytes = 2 * in_rows * itemsize + 2 * 8 * 4 + 2 * H * 4
    max_tile = max(LANE, ((_VMEM_BUDGET - (2 << 20)) // per_lane_bytes // LANE) * LANE)
    tile_b = max(LANE, (int(tile_b) // LANE) * LANE)
    tile_b = min(tile_b, max_tile)

    Bp_lane = _round_up(B, LANE)
    tile_b = min(tile_b, Bp_lane)

    # Megacore split: only on multi-TensorCore chips (v7x) keep an even tile count so
    # both cores get balanced work; on single-TC chips keep the biggest single tile.
    if _num_tensorcores() >= 2 and Bp_lane >= 2 * LANE:
        n_tiles = max(2, 2 * (-(-Bp_lane // (2 * tile_b))))     # even number of tiles
        tile_b = _round_up(-(-Bp_lane // n_tiles), LANE)

    Bp = _round_up(B, tile_b)
    grid = (Bp // tile_b,)

    # --- Operand prep (fuses inside this jit) -------------------------------------
    h_cat = jnp.concatenate([x, action], axis=-1)               # [B, S+A]
    hT = jnp.pad(h_cat.T, ((0, 0), (0, Bp - B))).astype(io_dtype)   # [S+A, Bp]
    w1T = w1.T.astype(io_dtype)                                 # [H, S+A]
    w2T = w2.T.astype(io_dtype)                                 # [H, H]
    b1c = b1.reshape(H, 1).astype(jnp.float32)                  # biases stay f32
    b2c = b2.reshape(H, 1).astype(jnp.float32)
    w3c = w3.reshape(H, 1).astype(jnp.float32)                  # fc3 on the VPU, f32
    b3c = b3.reshape(1, 1).astype(jnp.float32)

    # --- VMEM limit / cost estimate ------------------------------------------------
    vmem_est = (2 * in_rows * tile_b * itemsize                 # double-buffered input
                + 2 * 8 * tile_b * 4                            # double-buffered output
                + 2 * H * tile_b * 4                            # h1 + h2 intermediates
                + (2 << 20))                                    # weights + headroom
    vmem_limit = int(min(32 << 20, max(16 << 20, vmem_est)))

    weight_bytes = (w1T.size + w2T.size) * itemsize + (b1c.size + b2c.size + w3c.size + b3c.size) * 4
    cost = pl.CostEstimate(
        flops=2 * Bp * (H * (S + A) + H * H + H),
        transcendentals=0,
        bytes_accessed=Bp * (S + A) * itemsize + Bp * 4 + weight_bytes,
    )

    const = lambda i: (0, 0)                                    # weights: same block every step
    out = pl.pallas_call(
        value_mlp_kernel,
        out_shape=jax.ShapeDtypeStruct((1, Bp), jnp.float32),
        grid_spec=pltpu.PrefetchScalarGridSpec(
            num_scalar_prefetch=0,
            grid=grid,
            in_specs=[
                pl.BlockSpec((S + A, tile_b), lambda i: (0, i)),   # merged input slab (lane-dense)
                pl.BlockSpec((H, S + A), const),                   # w1^T (concat folded in)
                pl.BlockSpec((H, 1), const),                       # b1
                pl.BlockSpec((H, H), const),                       # w2^T
                pl.BlockSpec((H, 1), const),                       # b2
                pl.BlockSpec((H, 1), const),                       # w3
                pl.BlockSpec((1, 1), const),                       # b3
            ],
            out_specs=pl.BlockSpec((1, tile_b), lambda i: (0, i)), # lane-dense output
        ),
        compiler_params=pltpu.CompilerParams(
            dimension_semantics=("parallel",),
            vmem_limit_bytes=vmem_limit,
        ),
        cost_estimate=cost,
    )(hT, w1T, b1c, w2T, b2c, w3c, b3c)

    return out[:, :B].T                                         # back to [B, 1]


def init_params(key, input_dim=3, hidden_dim=64):
    """Deterministic synthetic parameters matching the module's shapes."""
    k1, k2, k3, k4, k5, k6 = jax.random.split(key, 6)
    w1 = jax.random.normal(k1, (input_dim, hidden_dim), jnp.float32) * 0.1
    b1 = jax.random.normal(k2, (1, hidden_dim), jnp.float32) * 0.01
    w2 = jax.random.normal(k3, (hidden_dim, hidden_dim), jnp.float32) * 0.1
    b2 = jax.random.normal(k4, (1, hidden_dim), jnp.float32) * 0.01
    w3 = jax.random.normal(k5, (hidden_dim, 1), jnp.float32) * 0.1
    b3 = jax.random.normal(k6, (1, 1), jnp.float32) * 0.01
    return (w1, b1, w2, b2, w3, b3)


def reference_forward(x, action, params):
    w1, b1, w2, b2, w3, b3 = params
    h = jnp.concatenate([x, action], axis=-1)
    h = jnp.maximum(h @ w1 + b1, 0.0)
    h = jnp.maximum(h @ w2 + b2, 0.0)
    return h @ w3 + b3


if __name__ == "__main__":
    key = jax.random.PRNGKey(0)
    kx, ka, kp = jax.random.split(key, 3)

    B, STATE_DIM, ACTION_DIM, HIDDEN = 16, 2, 1, 64
    x = jax.random.normal(kx, (B, STATE_DIM), jnp.float32)
    action = jax.random.normal(ka, (B, ACTION_DIM), jnp.float32)
    params = init_params(kp, input_dim=STATE_DIM + ACTION_DIM, hidden_dim=HIDDEN)

    out = value_mlp_forward(x, action, params)      # default f32 path (exact parity)
    out = jax.block_until_ready(out)

    ref = reference_forward(x, action, params)
    assert out.shape == (B, 1), out.shape
    assert jnp.allclose(out, ref, atol=1e-4, rtol=1e-4), "mismatch vs reference"

    print("KERNEL_OK")
</pallas_src>

<mosaic_0001>
module attributes {stable_mosaic.version = 11 : i64} {
  func.func @value_mlp_kernel(%arg0: i32, %arg1: memref<3x128xf32, #tpu.memory_space<vmem>>, %arg2: memref<64x3xf32, #tpu.memory_space<vmem>>, %arg3: memref<64x1xf32, #tpu.memory_space<vmem>>, %arg4: memref<64x64xf32, #tpu.memory_space<vmem>>, %arg5: memref<64x1xf32, #tpu.memory_space<vmem>>, %arg6: memref<64x1xf32, #tpu.memory_space<vmem>>, %arg7: memref<1x1xf32, #tpu.memory_space<vmem>>, %arg8: memref<1x128xf32, #tpu.memory_space<vmem>>) attributes {dimension_semantics = [#tpu.dimension_semantics<parallel>], iteration_bounds = array<i64: 1>, scalar_prefetch = 0 : i64, scratch_operands = 0 : i64, tpu.core_type = #tpu.core_type<tc>, window_params = [{transform_indices = @transform_0, window_bounds = array<i64: 3, 128>}, {pipeline_mode = #tpu.pipeline_mode<synchronous>, transform_indices = @transform_1, window_bounds = array<i64: 64, 3>}, {pipeline_mode = #tpu.pipeline_mode<synchronous>, transform_indices = @transform_2, window_bounds = array<i64: 64, 1>}, {pipeline_mode = #tpu.pipeline_mode<synchronous>, transform_indices = @transform_3, window_bounds = array<i64: 64, 64>}, {pipeline_mode = #tpu.pipeline_mode<synchronous>, transform_indices = @transform_4, window_bounds = array<i64: 64, 1>}, {pipeline_mode = #tpu.pipeline_mode<synchronous>, transform_indices = @transform_5, window_bounds = array<i64: 64, 1>}, {pipeline_mode = #tpu.pipeline_mode<synchronous>, transform_indices = @transform_6, window_bounds = array<i64: 1, 1>}, {transform_indices = @transform_7, window_bounds = array<i64: 1, 128>}]} {
    %c0 = arith.constant 0 : index
    %c0_0 = arith.constant 0 : index
    %0 = vector.load %arg2[%c0, %c0_0] : memref<64x3xf32, #tpu.memory_space<vmem>>, vector<64x3xf32>
    %c0_1 = arith.constant 0 : index
    %c0_2 = arith.constant 0 : index
    %1 = vector.load %arg1[%c0_1, %c0_2] : memref<3x128xf32, #tpu.memory_space<vmem>>, vector<3x128xf32>
    %cst = arith.constant dense<0.000000e+00> : vector<64x128xf32>
    %2 = tpu.matmul %0, %1, %cst {dimension_numbers = #tpu.dot_dimension_numbers<[1], [0], [0], [1], [0, 0, 1, 1], [], []>} : vector<64x3xf32>, vector<3x128xf32>, vector<64x128xf32> -> vector<64x128xf32>
    %c0_3 = arith.constant 0 : index
    %c0_4 = arith.constant 0 : index
    %3 = vector.load %arg3[%c0_3, %c0_4] : memref<64x1xf32, #tpu.memory_space<vmem>>, vector<64x1xf32>
    %4 = vector.broadcast %3 : vector<64x1xf32> to vector<64x128xf32>
    %5 = arith.addf %2, %4 : vector<64x128xf32>
    %cst_5 = arith.constant 0.000000e+00 : f32
    %6 = vector.broadcast %cst_5 : f32 to vector<64x128xf32>
    %7 = arith.maximumf %5, %6 : vector<64x128xf32>
    %c0_6 = arith.constant 0 : index
    %c0_7 = arith.constant 0 : index
    %8 = vector.load %arg4[%c0_6, %c0_7] : memref<64x64xf32, #tpu.memory_space<vmem>>, vector<64x64xf32>
    %cst_8 = arith.constant dense<0.000000e+00> : vector<64x128xf32>
    %9 = tpu.matmul %8, %7, %cst_8 {dimension_numbers = #tpu.dot_dimension_numbers<[1], [0], [0], [1], [0, 0, 1, 1], [], []>} : vector<64x64xf32>, vector<64x128xf32>, vector<64x128xf32> -> vector<64x128xf32>
    %c0_9 = arith.constant 0 : index
    %c0_10 = arith.constant 0 : index
    %10 = vector.load %arg5[%c0_9, %c0_10] : memref<64x1xf32, #tpu.memory_space<vmem>>, vector<64x1xf32>
    %11 = vector.broadcast %10 : vector<64x1xf32> to vector<64x128xf32>
    %12 = arith.addf %9, %11 : vector<64x128xf32>
    %cst_11 = arith.constant 0.000000e+00 : f32
    %13 = vector.broadcast %cst_11 : f32 to vector<64x128xf32>
    %14 = arith.maximumf %12, %13 : vector<64x128xf32>
    %c0_12 = arith.constant 0 : index
    %c0_13 = arith.constant 0 : index
    %15 = vector.load %arg6[%c0_12, %c0_13] : memref<64x1xf32, #tpu.memory_space<vmem>>, vector<64x1xf32>
    %16 = vector.broadcast %15 : vector<64x1xf32> to vector<64x128xf32>
    %17 = arith.mulf %14, %16 : vector<64x128xf32>
    %cst_14 = arith.constant dense<0.000000e+00> : vector<128xf32>
    %18 = vector.multi_reduction <add>, %17, %cst_14 [0] : vector<64x128xf32> to vector<128xf32>
    %19 = vector.shape_cast %18 : vector<128xf32> to vector<1x128xf32>
    %c0_15 = arith.constant 0 : index
    %c0_16 = arith.constant 0 : index
    %20 = vector.load %arg7[%c0_15, %c0_16] : memref<1x1xf32, #tpu.memory_space<vmem>>, vector<1x1xf32>
    %21 = vector.broadcast %20 : vector<1x1xf32> to vector<1x128xf32>
    %22 = arith.addf %19, %21 : vector<1x128xf32>
    %c0_17 = arith.constant 0 : index
    %c0_18 = arith.constant 0 : index
    %23 = vector.load %arg8[%c0_17, %c0_18] : memref<1x128xf32, #tpu.memory_space<vmem>>, vector<1x128xf32>
    tpu.vector_store %arg8[%c0_17, %c0_18], %22 {strides = array<i32>} : memref<1x128xf32, #tpu.memory_space<vmem>>, vector<1x128xf32>,
    return
  }
  func.func @transform_0(%arg0: i32) -> (i32, i32) {
    %c0_i32 = arith.constant 0 : i32
    %c0_i32_0 = arith.constant 0 : i32
    return %c0_i32, %arg0 : i32, i32
  }
  func.func @transform_1(%arg0: i32) -> (i32, i32) {
    %c0_i32 = arith.constant 0 : i32
    %c0_i32_0 = arith.constant 0 : i32
    %c0_i32_1 = arith.constant 0 : i32
    return %c0_i32, %c0_i32_0 : i32, i32
  }
  func.func @transform_2(%arg0: i32) -> (i32, i32) {
    %c0_i32 = arith.constant 0 : i32
    %c0_i32_0 = arith.constant 0 : i32
    %c0_i32_1 = arith.constant 0 : i32
    return %c0_i32, %c0_i32_0 : i32, i32
  }
  func.func @transform_3(%arg0: i32) -> (i32, i32) {
    %c0_i32 = arith.constant 0 : i32
    %c0_i32_0 = arith.constant 0 : i32
    %c0_i32_1 = arith.constant 0 : i32
    return %c0_i32, %c0_i32_0 : i32, i32
  }
  func.func @transform_4(%arg0: i32) -> (i32, i32) {
    %c0_i32 = arith.constant 0 : i32
    %c0_i32_0 = arith.constant 0 : i32
    %c0_i32_1 = arith.constant 0 : i32
    return %c0_i32, %c0_i32_0 : i32, i32
  }
  func.func @transform_5(%arg0: i32) -> (i32, i32) {
    %c0_i32 = arith.constant 0 : i32
    %c0_i32_0 = arith.constant 0 : i32
    %c0_i32_1 = arith.constant 0 : i32
    return %c0_i32, %c0_i32_0 : i32, i32
  }
  func.func @transform_6(%arg0: i32) -> (i32, i32) {
    %c0_i32 = arith.constant 0 : i32
    %c0_i32_0 = arith.constant 0 : i32
    %c0_i32_1 = arith.constant 0 : i32
    return %c0_i32, %c0_i32_0 : i32, i32
  }
  func.func @transform_7(%arg0: i32) -> (i32, i32) {
    %c0_i32 = arith.constant 0 : i32
    %c0_i32_0 = arith.constant 0 : i32
    return %c0_i32, %arg0 : i32, i32
  }
}

</mosaic_0001>

<bundles_post_ra>
// kernel: value_mlp_forward.1
= control target key start
LH: loop header
LB: loop body
LE: loop exit
PB: predicated region body
PF: predicated region fallthrough
CT: control target
= control target key end

     0   :  { %vm110_vm0 = vcmask 1042432   ;;  %v413_v0 = vmov 0   ;;  %vm85_vm1 = vcmask 23552   ;;  %vm219_vm2 = vcmask 523264   ;;  %s599_s2 = inlined_call_operand.vmem [shape: f32[64,1], index: 2, kind: input, shape index: {}]   ;;  %s600_s0 = inlined_call_operand.vmem [shape: f32[3,128], index: 0, kind: input, shape index: {}]   ;;  %s601_s1 = inlined_call_operand.vmem [shape: f32[64,3], index: 1, kind: input, shape index: {}]   ;;  %s602_s4 = inlined_call_operand.vmem [shape: f32[64,1], index: 4, kind: input, shape index: {}]   ;;  %s603_s6 = inlined_call_operand.<no memory space> [shape: f32[1,1], index: 6, kind: input, shape index: {}]   ;;  %s604_s5 = inlined_call_operand.vmem [shape: f32[64,1], index: 5, kind: input, shape index: {}]   ;;  %s605_s3 = inlined_call_operand.vmem [shape: f32[64,64], index: 3, kind: input, shape index: {}]   ;;  %s606_s7 = inlined_call_operand.vmem [shape: f32[1,128], index: 7, kind: output, shape index: {}]  }
   0x1   :  { %411 = vset.pattern.permute.xlu1 %v413_v0  ;;  %410 = vset.pattern.permute.xlu0 %v413_v0  ;;  %v44_v1 = vld [vmem:[%s599_s2 + $0x38] sm:$0xff]  ;;  %v42_v2 = vld [vmem:[%s599_s2 + $0x28] sm:$0xff]  ;;  %v36_v3 = vld [vmem:[%s600_s0] sm:$0x7]  ;;  %v12_v20 = vstv %s603_s6 }
   0x2   :  { %82 = vperm.xlu0 %410, %v44_v1   ;;  %72 = vperm.xlu1 %411, %v42_v2   ;;  %v28_v4 = vld [vmem:[%s601_s1] sm:$0xff]  ;;  %v33_v5 = vld [vmem:[%s601_s1 + $0x28] sm:$0xff]  ;;  %v40_v6 = vld [vmem:[%s599_s2 + $0x18] sm:$0xff]  ;;  %13 = vst [vmem:[#allocation2] sm:$0x1] %v12_v20 }
   0x3   :  { %375 = vmatpush.msk.msra.mxu0 %vm110_vm0, %v36_v3  ;;  %392 = vmatpush.msk.msra.mxu3 %vm110_vm0, %v36_v3  ;;  %v43_v7 = vld [vmem:[%s599_s2 + $0x30] sm:$0xff]  ;;  %v41_v8 = vld [vmem:[%s599_s2 + $0x20] sm:$0xff]  ;;  %v29_v9 = vld [vmem:[%s601_s1 + $0x8] sm:$0xff] }
   0x4   :  { %376 = vmatmul.msk.f32.vlgmr.msra.gmra.mxu0 %vm85_vm1, %v28_v4  ;;  %381 = vmatmul.msk.f32.vlgmr.msra.gmra.mxu3 %vm85_vm1, %v33_v5  ;;  %v34_v10 = vld [vmem:[%s601_s1 + $0x30] sm:$0xff]  ;;  %v38_v12 = vld [vmem:[%s599_s2 + $0x8] sm:$0xff]  ;;  %v37_v13 = vld [vmem:[%s599_s2] sm:$0xff] }
   0x5   :  { %412 = vset.pattern.permute.xlu2 %v413_v0  ;;  %v39_v11 = vld [vmem:[%s599_s2 + $0x10] sm:$0xff]  ;;  %v35_v15 = vld [vmem:[%s601_s1 + $0x38] sm:$0xff]  ;;  %v171_v16 = vld [vmem:[%s602_s4] sm:$0xff] }
   0x6   :  { %62 = vperm.xlu2 %412, %v40_v6   ;;  %v30_v14 = vld [vmem:[%s601_s1 + $0x10] sm:$0xff]  ;;  %v172_v17 = vld [vmem:[%s602_s4 + $0x8] sm:$0xff]  ;;  %v31_v19 = vld [vmem:[%s601_s1 + $0x18] sm:$0xff] }
   0x7   :  { %v173_v18 = vld [vmem:[%s602_s4 + $0x10] sm:$0xff]  ;;  %v174_v21 = vld [vmem:[%s602_s4 + $0x18] sm:$0xff]  ;;  %v175_v22 = vld [vmem:[%s602_s4 + $0x20] sm:$0xff] }
   0x8   :  { %v176_v23 = vld [vmem:[%s602_s4 + $0x28] sm:$0xff]  ;;  %v32_v24 = vld [vmem:[%s601_s1 + $0x20] sm:$0xff]  ;;  %v295_v27 = vld [vmem:[%s604_s5 + $0x10] sm:$0xff] }
   0x9   :  { %v293_v25 = vld [vmem:[%s604_s5] sm:$0xff]  ;;  %v294_v26 = vld [vmem:[%s604_s5 + $0x8] sm:$0xff]  ;;  %v296_v28 = vld [vmem:[%s604_s5 + $0x18] sm:$0xff] }
   0xa   :  { %77 = vperm.xlu0 %410, %v43_v7   ;;  %67 = vperm.xlu1 %411, %v41_v8   ;;  %v177_v29 = vld [vmem:[%s602_s4 + $0x30] sm:$0xff]  ;;  %v297_v30 = vld [vmem:[%s604_s5 + $0x20] sm:$0xff]  ;;  %v178_v31 = vld [vmem:[%s602_s4 + $0x38] sm:$0xff] }
   0xb   :  { %v298_v32 = vld [vmem:[%s604_s5 + $0x28] sm:$0xff]  ;;  %v299_v33 = vld [vmem:[%s604_s5 + $0x30] sm:$0xff]  ;;  %v300_v34 = vld [vmem:[%s604_s5 + $0x38] sm:$0xff] }
   0xc   :  { %377 = vmatmul.msk.f32.gmra.mxu0 %vm85_vm1, %v29_v9  ;;  %382 = vmatmul.msk.f32.gmra.mxu3 %vm85_vm1, %v34_v10  ;;  %v362_v35 = vld [vmem:[#allocation2] sm:$0x1]  ;;  %v166_v5 = vld [vmem:[%s605_s3 + $0x18] sm:$0xff]  ;;  %v164_v7 = vld [vmem:[%s605_s3 + $0x8] sm:$0xff] }
   0xd   :  { %v163_v4 = vld [vmem:[%s605_s3] sm:$0xff]  ;;  %v170_v6 = vld [vmem:[%s605_s3 + $0x38] sm:$0xff]  ;;  %v165_v9 = vld [vmem:[%s605_s3 + $0x10] sm:$0xff] }
   0xe   :  { %57 = vperm.xlu2 %412, %v39_v11   ;;  %v167_v8 = vld [vmem:[%s605_s3 + $0x20] sm:$0xff]  ;;  %v168_v10 = vld [vmem:[%s605_s3 + $0x28] sm:$0xff]  ;;  %v169_v11 = vld [vmem:[%s605_s3 + $0x30] sm:$0xff] }
  0x12   :  { %52 = vperm.xlu0 %410, %v38_v12   ;;  %47 = vperm.xlu1 %411, %v37_v13  }
  0x14   :  { %378 = vmatmul.msk.f32.gmra.mxu0 %vm85_vm1, %v30_v14  ;;  %383 = vmatmul.msk.f32.gmra.mxu3 %vm85_vm1, %v35_v15 }
  0x16   :  { %181 = vperm.xlu2 %412, %v171_v16  }
  0x1a   :  { %186 = vperm.xlu0 %410, %v172_v17   ;;  %191 = vperm.xlu1 %411, %v173_v18  }
  0x1c   :  { %379 = vmatmul.msk.f32.gmra.mxu0 %vm85_vm1, %v31_v19 }
  0x1e   :  { %196 = vperm.xlu2 %412, %v174_v21  }
  0x22   :  { %201 = vperm.xlu0 %410, %v175_v22   ;;  %206 = vperm.xlu1 %411, %v176_v23  }
  0x24   :  { %380 = vmatmul.msk.f32.gmra.mxu0 %vm85_vm1, %v32_v24 }
  0x26   :  { %303 = vperm.xlu2 %412, %v293_v25  }
  0x2a   :  { %308 = vperm.xlu0 %410, %v294_v26   ;;  %313 = vperm.xlu1 %411, %v295_v27  }
  0x2e   :  { %318 = vperm.xlu2 %412, %v296_v28  }
  0x32   :  { %211 = vperm.xlu0 %410, %v177_v29   ;;  %323 = vperm.xlu1 %411, %v297_v30  }
  0x36   :  { %216 = vperm.xlu2 %412, %v178_v31  }
  0x3a   :  { %328 = vperm.xlu0 %410, %v298_v32   ;;  %333 = vperm.xlu1 %411, %v299_v33  }
  0x3e   :  { %338 = vperm.xlu2 %412, %v300_v34  }
  0x42   :  { %365 = vperm.xlu0 %410, %v362_v35  }
  0x60   :  { %v63_v47 = vpop.permute.xlu2 %62 }
  0x68   :  { %v58_v57 = vpop.permute.xlu2 %57 }
  0x70   :  { %v182_v12 = vpop.permute.xlu2 %181 }
  0x74   :  { %v83_v39 = vpop.permute.xlu0 %82  ;;  %v73_v41 = vpop.permute.xlu1 %72 }
  0x78   :  { %v197_v15 = vpop.permute.xlu2 %196 }
  0x7c   :  { %v78_v43 = vpop.permute.xlu0 %77  ;;  %v68_v51 = vpop.permute.xlu1 %67 }
  0x80   :  { %v304_v19 = vpop.permute.xlu2 %303 }
  0x81   :  { %v131_v36 = vpop.f32.mrf.mxu0 }
  0x84   :  { %v53_v60 = vpop.permute.xlu0 %52  ;;  %v48_v61 = vpop.permute.xlu1 %47 }
  0x85   :  { %v132_v0 = vadd.f32 %v131_v36, %v48_v61 }
  0x87   :  { %v146_v37 = vpop.f32.mrf.mxu3  ;;  %v155_v3 = vmax.f32 %v132_v0, 0.0 }
  0x88   :  { %v147_v49 = vadd.f32 %v146_v37, %v73_v41  ;;  %v319_v30 = vpop.permute.xlu2 %318 }
  0x89   :  { %v134_v38 = vpop.f32.mrf.mxu0 }
  0x8a   :  { %v160_v53 = vmax.f32 %v147_v49, 0.0  ;;  %v135_v62 = vadd.f32 %v134_v38, %v53_v60 }
  0x8c   :  { %v156_v2 = vmax.f32 %v135_v62, 0.0  ;;  %v187_v13 = vpop.permute.xlu0 %186  ;;  %v192_v14 = vpop.permute.xlu1 %191 }
  0x8f   :  { %v149_v40 = vpop.f32.mrf.mxu3 }
  0x90   :  { %v150_v45 = vadd.f32 %v149_v40, %v78_v43 }
  0x91   :  { %v137_v42 = vpop.f32.mrf.mxu0 }
  0x92   :  { %v161_v52 = vmax.f32 %v150_v45, 0.0  ;;  %v138_v58 = vadd.f32 %v137_v42, %v58_v57 }
  0x94   :  { %v157_v1 = vmax.f32 %v138_v58, 0.0  ;;  %v202_v17 = vpop.permute.xlu0 %201  ;;  %v207_v18 = vpop.permute.xlu1 %206 }
  0x97   :  { %v152_v44 = vpop.f32.mrf.mxu3 }
  0x98   :  { %v153_v46 = vadd.f32 %v152_v44, %v83_v39 }
  0x99   :  { %v140_v48 = vpop.f32.mrf.mxu0 }
  0x9a   :  { %v162_v50 = vmax.f32 %v153_v46, 0.0  ;;  %v141_v55 = vadd.f32 %v140_v48, %v63_v47  ;;  %v217_v47 = vpop.permute.xlu2 %216 }
  0x9c   :  { %252 = vmatpush.msra.mxu1 %v162_v50  ;;  %393 = vmatpush.msra.mxu2 %v162_v50  ;;  %v158_v63 = vmax.f32 %v141_v55, 0.0  ;;  %v309_v23 = vpop.permute.xlu0 %308  ;;  %v314_v26 = vpop.permute.xlu1 %313 }
  0x9d   :  { %394 = vmatpush.msrb.mxu3 %v162_v50 }
  0x9e   :  { %253 = vmatpush.msra.mxu1 %v161_v52  ;;  %395 = vmatpush.msra.mxu2 %v161_v52 }
  0x9f   :  { %396 = vmatpush.msrb.mxu3 %v161_v52 }
  0xa0   :  { %254 = vmatpush.msra.mxu1 %v160_v53  ;;  %397 = vmatpush.msra.mxu2 %v160_v53 }
  0xa1   :  { %398 = vmatpush.msrb.mxu3 %v160_v53  ;;  %v143_v54 = vpop.f32.mrf.mxu0 }
  0xa2   :  { %v144_v56 = vadd.f32 %v143_v54, %v68_v51 }
  0xa4   :  { %v159_v59 = vmax.f32 %v144_v56, 0.0  ;;  %v212_v36 = vpop.permute.xlu0 %211  ;;  %v324_v44 = vpop.permute.xlu1 %323 }
  0xa6   :  { %255 = vmatpush.msra.mxu1 %v159_v59  ;;  %399 = vmatpush.msra.mxu2 %v159_v59 }
  0xa7   :  { %400 = vmatpush.msrb.mxu3 %v159_v59 }
  0xa8   :  { %256 = vmatpush.msra.mxu1 %v158_v63  ;;  %401 = vmatpush.msra.mxu2 %v158_v63 }
  0xa9   :  { %402 = vmatpush.msrb.mxu3 %v158_v63  ;;  %v339_v63 = vpop.permute.xlu2 %338 }
  0xaa   :  { %257 = vmatpush.msra.mxu1 %v157_v1  ;;  %403 = vmatpush.msra.mxu2 %v157_v1 }
  0xab   :  { %404 = vmatpush.msrb.mxu3 %v157_v1 }
  0xac   :  { %258 = vmatpush.msra.mxu1 %v156_v2  ;;  %405 = vmatpush.msra.mxu2 %v156_v2  ;;  %v329_v53 = vpop.permute.xlu0 %328  ;;  %v334_v60 = vpop.permute.xlu1 %333 }
  0xad   :  { %406 = vmatpush.msrb.mxu3 %v156_v2 }
  0xae   :  { %259 = vmatpush.msra.mxu1 %v155_v3  ;;  %407 = vmatpush.msra.mxu2 %v155_v3 }
  0xaf   :  { %408 = vmatpush.msrb.mxu3 %v155_v3  ;;  %384 = vmatmul.msk.f32.vlgmr.msra.gmra.mxu1 %vm219_vm2, %v163_v4 }
  0xb0   :  { %387 = vmatmul.msk.f32.vlgmr.msra.gmra.mxu2 %vm219_vm2, %v166_v5  ;;  %391 = vmatmul.msk.f32.vlgmr.msrb.gmra.mxu3 %vm219_vm2, %v170_v6 }
  0xb7   :  { %385 = vmatmul.msk.f32.gmra.mxu1 %vm219_vm2, %v164_v7  ;;  %v366_v7 = vpop.permute.xlu0 %365 }
  0xb8   :  { %388 = vmatmul.msk.f32.gmra.mxu2 %vm219_vm2, %v167_v8 }
  0xbf   :  { %386 = vmatmul.msk.f32.gmra.mxu1 %vm219_vm2, %v165_v9  ;;  %v368_v9 = vperm.slane %v366_v7, 0 }
  0xc0   :  { %389 = vmatmul.msk.f32.gmra.mxu2 %vm219_vm2, %v168_v10 }
  0xc8   :  { %390 = vmatmul.msk.f32.gmra.mxu2 %vm219_vm2, %v169_v11 }
 0x12c   :  { %v261_v16 = vpop.f32.mrf.mxu1 }
 0x12d   :  { %v262_v24 = vadd.f32 %v261_v16, %v182_v12 }
 0x12f   :  { %v285_v28 = vmax.f32 %v262_v24, 0.0 }
 0x131   :  { %v341_v35 = vmul.f32 %v304_v19, %v285_v28 }
 0x133   :  { %v270_v20 = vpop.f32.mrf.mxu2  ;;  %v282_v48 = vpop.f32.mrf.mxu3 }
 0x134   :  { %v264_v21 = vpop.f32.mrf.mxu1  ;;  %v271_v32 = vadd.f32 %v270_v20, %v197_v15  ;;  %v283_v51 = vadd.f32 %v282_v48, %v217_v47 }
 0x135   :  { %v265_v22 = vadd.f32 %v264_v21, %v187_v13 }
 0x136   :  { %v288_v38 = vmax.f32 %v271_v32, 0.0  ;;  %v292_v58 = vmax.f32 %v283_v51, 0.0 }
 0x137   :  { %v286_v25 = vmax.f32 %v265_v22, 0.0 }
 0x138   :  { %v344_v45 = vmul.f32 %v319_v30, %v288_v38  ;;  %v348_v0 = vmul.f32 %v339_v63, %v292_v58 }
 0x139   :  { %v342_v33 = vmul.f32 %v309_v23, %v286_v25 }
 0x13b   :  { %v273_v27 = vpop.f32.mrf.mxu2  ;;  %v349_v39 = vadd.f32 %v342_v33, %v341_v35 }
 0x13c   :  { %v267_v29 = vpop.f32.mrf.mxu1  ;;  %v274_v40 = vadd.f32 %v273_v27, %v202_v17 }
 0x13d   :  { %v268_v31 = vadd.f32 %v267_v29, %v192_v14 }
 0x13e   :  { %v289_v46 = vmax.f32 %v274_v40, 0.0 }
 0x13f   :  { %v287_v34 = vmax.f32 %v268_v31, 0.0 }
 0x140   :  { %v345_v52 = vmul.f32 %v324_v44, %v289_v46 }
 0x141   :  { %v343_v37 = vmul.f32 %v314_v26, %v287_v34 }
 0x143   :  { %v276_v41 = vpop.f32.mrf.mxu2  ;;  %v350_v42 = vadd.f32 %v349_v39, %v343_v37 }
 0x144   :  { %v277_v43 = vadd.f32 %v276_v41, %v207_v18 }
 0x145   :  { %v351_v49 = vadd.f32 %v350_v42, %v344_v45 }
 0x146   :  { %v290_v50 = vmax.f32 %v277_v43, 0.0 }
 0x147   :  { %v352_v56 = vadd.f32 %v351_v49, %v345_v52 }
 0x148   :  { %v346_v55 = vmul.f32 %v329_v53, %v290_v50 }
 0x14a   :  { %v353_v61 = vadd.f32 %v352_v56, %v346_v55 }
 0x14b   :  { %v279_v54 = vpop.f32.mrf.mxu2 }
 0x14c   :  { %v280_v57 = vadd.f32 %v279_v54, %v212_v36 }
 0x14e   :  { %v291_v59 = vmax.f32 %v280_v57, 0.0 }
 0x150   :  { %v347_v62 = vmul.f32 %v334_v60, %v291_v59 }
 0x152   :  { %v354_v1 = vadd.f32 %v353_v61, %v347_v62 }
 0x154   :  { %v355_v2 = vadd.f32 %v354_v1, %v348_v0 }
 0x156   :  { %v356_v3 = vrot.slane %v355_v2, 4 }
 0x158   :  { %v357_v4 = vadd.f32 %v356_v3, %v355_v2 }
 0x15a   :  { %v358_v5 = vrot.slane %v357_v4, 2 }
 0x15c   :  { %v359_v6 = vadd.f32 %v358_v5, %v357_v4 }
 0x15e   :  { %v360_v8 = vrot.slane %v359_v6, 1 }
 0x160   :  { %v361_v10 = vadd.f32 %v360_v8, %v359_v6 }
 0x162   :  { %v369_v11 = vadd.f32 %v368_v9, %v361_v10 }
 0x164   :  { %370 = vst [vmem:[%s606_s7] sm:$0x1] %v369_v11 }

</bundles_post_ra>
